<compile_context>
chip_gen: v7x
topology: tpu7x:2x2x1
jax: 0.10.0
libtpu: 0.0.40
codegen_flags: <defaults>
</compile_context>

<pallas_src>
import functools

import jax
import jax.numpy as jnp
from jax.experimental import pallas as pl
from jax.experimental.pallas import tpu as pltpu


def _round_up(x, m):
    return ((x + m - 1) // m) * m


# ----------------------------------------------------------------------------
# Pallas kernel 1: tiled matmul + bias (fused coef/freq 3x3 conv via im2col)
# ----------------------------------------------------------------------------
def _matmul_bias_kernel(x_ref, w_ref, b_ref, o_ref):
    acc = jnp.dot(x_ref[...], w_ref[...], preferred_element_type=jnp.float32)
    o_ref[...] = (acc + b_ref[...]).astype(o_ref.dtype)


def matmul_bias(x, w, b, *, tile_m=256):
    M, K = x.shape
    Kw, N = w.shape
    assert K == Kw and M % tile_m == 0
    return pl.pallas_call(
        _matmul_bias_kernel,
        out_shape=jax.ShapeDtypeStruct((M, N), jnp.float32),
        grid=(M // tile_m,),
        in_specs=[
            pl.BlockSpec((tile_m, K), lambda i: (i, 0)),
            pl.BlockSpec((K, N), lambda i: (0, 0)),
            pl.BlockSpec((1, N), lambda i: (0, 0)),
        ],
        out_specs=pl.BlockSpec((tile_m, N), lambda i: (i, 0)),
        compiler_params=pltpu.CompilerParams(dimension_semantics=("parallel",)),
    )(x, w, b.reshape(1, N))


def conv3x3_pallas(x_nhwc, w_hwio, b, *, tile_m=256):
    """3x3 conv, padding=1, stride=1 (PyTorch Conv2d semantics) via im2col + Pallas matmul.

    bf16 MXU operands, f32 accumulation; rows padded to tile_m, output channels
    padded to a multiple of 128 for lane-dense stores."""
    B, H, W, C = x_nhwc.shape
    kh, kw, ci, co = w_hwio.shape
    assert (kh, kw, ci) == (3, 3, C)
    xp = jnp.pad(x_nhwc, ((0, 0), (1, 1), (1, 1), (0, 0)))
    cols = [xp[:, dh:dh + H, dw:dw + W, :] for dh in range(3) for dw in range(3)]
    patches = jnp.concatenate(cols, axis=-1).reshape(B * H * W, 9 * C)

    M = B * H * W
    M_pad = _round_up(M, tile_m)
    co_pad = _round_up(co, 128)
    patches = jnp.pad(patches, ((0, M_pad - M), (0, 0))).astype(jnp.bfloat16)
    w2d = jnp.pad(w_hwio.reshape(9 * C, co),
                  ((0, 0), (0, co_pad - co))).astype(jnp.bfloat16)
    b2d = jnp.pad(b, ((0, co_pad - co),)).astype(jnp.float32)

    out = matmul_bias(patches, w2d, b2d, tile_m=tile_m)
    return out[:M, :co].reshape(B, H, W, co)


# ----------------------------------------------------------------------------
# Pallas kernel 2: fused local-ensemble + MLP ("layers") + flow-inverse stand-in
# ----------------------------------------------------------------------------
def _ensemble_flow_kernel(side_ref, ca_ref, cb_ref, fa_ref, fb_ref,
                          ea_ref, eb_ref, tm_ref,
                          w0a_ref, w0b_ref, b0_ref, w1_ref, b1_ref,
                          w2_ref, b2_ref, w3_ref, b3_ref, o_ref,
                          *, h2, flow_layers):
    f32 = jnp.float32
    bf16 = jnp.bfloat16

    side = side_ref[...]
    r_a = side[:, 0:8]                         # [rel0 per corner | rel0 swapped]
    r_b = side[:, 8:16]                        # [rel1 per corner | rel1 swapped]
    pvec = side[:, 16:16 + h2]                 # phase vector
    base = side[:, 16 + h2:19 + h2]            # bilinear LR sample
    z0 = side[:, 19 + h2:22 + h2]              # temperature * noise

    # areas (cols 0:4) and corner-swapped areas (cols 4:8)
    prods = jnp.abs(r_a * r_b) + 1e-9
    tot = jnp.sum(prods[:, 0:4], axis=-1, keepdims=True)

    # scalar-per-corner -> h2-lanes broadcasts via tiny 0/1 MXU matmuls
    rc0_b = jnp.dot(r_a, ea_ref[...], preferred_element_type=f32)    # (tn, 4*h2)
    rc1_b = jnp.dot(r_b, ea_ref[...], preferred_element_type=f32)
    w_b = jnp.dot(prods, eb_ref[...], preferred_element_type=f32) / tot
    pvec_b = jnp.dot(pvec, tm_ref[...], preferred_element_type=f32)

    # frequency modulation on full-width lanes
    fm = fa_ref[...] * rc0_b + fb_ref[...] * rc1_b + pvec_b           # (tn, 4*h2)
    cosm = jnp.cos(jnp.pi * fm)
    sinm = jnp.sin(jnp.pi * fm)
    feat_cos = w_b * ca_ref[...] * cosm
    feat_sin = w_b * cb_ref[...] * sinm

    # 1x1-conv MLP ("layers") — bf16 MXU operands, f32 accumulation
    x = (jnp.dot(feat_cos.astype(bf16), w0a_ref[...], preferred_element_type=f32)
         + jnp.dot(feat_sin.astype(bf16), w0b_ref[...], preferred_element_type=f32)
         + b0_ref[...])
    x = jnp.maximum(x, 0.0)
    x = jnp.maximum(jnp.dot(x.astype(bf16), w1_ref[...],
                            preferred_element_type=f32) + b1_ref[...], 0.0)
    x = jnp.maximum(jnp.dot(x.astype(bf16), w2_ref[...],
                            preferred_element_type=f32) + b2_ref[...], 0.0)
    aff = jnp.dot(x.astype(bf16), w3_ref[...], preferred_element_type=f32) + b3_ref[...]

    # TODO(synk): `imnet` comes from an external spec; its inverse is approximated
    # here with flow_layers sequential affine layers z <- z * exp(s_l) + t_l.
    tl = 3 * flow_layers
    scales = jnp.exp(aff[:, :tl])              # single wide EUP exp (hoisted)
    shifts = aff[:, tl:]
    z = z0
    for l in range(flow_layers):
        z = z * scales[:, 3 * l:3 * l + 3] + shifts[:, 3 * l:3 * l + 3]

    res = z + base                             # (tn, 3)
    pad = jnp.zeros((res.shape[0], o_ref.shape[-1] - 3), f32)
    o_ref[...] = jnp.concatenate([res, pad], axis=-1).astype(o_ref.dtype)


def ensemble_flow(side, coef_a, coef_b, freq_a, freq_b, ea, eb, tm, mlp,
                  *, h2, flow_layers, tile_n=256):
    N_pad, s_pad = side.shape
    fh = coef_a.shape[-1]                      # 4 * h2
    assert N_pad % tile_n == 0
    w0a, w0b, b0, w1, b1, w2, b2, w3, b3 = mlp
    hidden = w1.shape[0]
    out_w = 128                                # lane-dense padded output slab
    kernel = functools.partial(_ensemble_flow_kernel, h2=h2, flow_layers=flow_layers)

    def row_spec(shape):
        return pl.BlockSpec(shape, lambda i: (i, 0))

    def full_spec(shape):
        return pl.BlockSpec(shape, lambda i: (0, 0))

    in_specs = [
        row_spec((tile_n, s_pad)),
        row_spec((tile_n, fh)), row_spec((tile_n, fh)),
        row_spec((tile_n, fh)), row_spec((tile_n, fh)),
        full_spec(ea.shape), full_spec(eb.shape), full_spec(tm.shape),
        full_spec(w0a.shape), full_spec(w0b.shape), full_spec((1, hidden)),
        full_spec(w1.shape), full_spec((1, hidden)),
        full_spec(w2.shape), full_spec((1, hidden)),
        full_spec(w3.shape), full_spec((1, w3.shape[-1])),
    ]
    return pl.pallas_call(
        kernel,
        out_shape=jax.ShapeDtypeStruct((N_pad, out_w), jnp.float32),
        grid=(N_pad // tile_n,),
        in_specs=in_specs,
        out_specs=pl.BlockSpec((tile_n, out_w), lambda i: (i, 0)),
        compiler_params=pltpu.CompilerParams(dimension_semantics=("parallel",)),
    )(side, coef_a, coef_b, freq_a, freq_b, ea, eb, tm,
      w0a, w0b, b0.reshape(1, -1), w1, b1.reshape(1, -1),
      w2, b2.reshape(1, -1), w3, b3.reshape(1, -1))


# ----------------------------------------------------------------------------
# JAX glue: make_coord, grid_sample emulation, forward wrapper
# ----------------------------------------------------------------------------
def make_coord(shape):
    seqs = [(-1.0 + (2.0 * jnp.arange(n, dtype=jnp.float32) + 1.0) / n) for n in shape]
    return jnp.stack(jnp.meshgrid(*seqs, indexing="ij"), axis=-1)


def _bilinear_border_sample(img_nhwc, coord):
    """grid_sample(img, coord.flip(-1), bilinear, border, align_corners=False)."""
    B, H, W, C = img_nhwc.shape
    _, qw, qh, _ = coord.shape
    gy = coord[..., 0]
    gx = coord[..., 1]
    iy = jnp.clip(((gy + 1.0) * H - 1.0) / 2.0, 0.0, H - 1.0)
    ix = jnp.clip(((gx + 1.0) * W - 1.0) / 2.0, 0.0, W - 1.0)
    iy0 = jnp.floor(iy)
    ix0 = jnp.floor(ix)
    wy1 = iy - iy0
    wx1 = ix - ix0
    wy0 = 1.0 - wy1
    wx0 = 1.0 - wx1
    iy0i = jnp.clip(iy0, 0, H - 1).astype(jnp.int32)
    ix0i = jnp.clip(ix0, 0, W - 1).astype(jnp.int32)
    iy1i = jnp.clip(iy0 + 1, 0, H - 1).astype(jnp.int32)
    ix1i = jnp.clip(ix0 + 1, 0, W - 1).astype(jnp.int32)

    flat = img_nhwc.reshape(B, H * W, C)

    def gather(yy, xx):
        idx = (yy * W + xx).reshape(B, qw * qh)
        return jnp.take_along_axis(flat, idx[..., None], axis=1).reshape(B, qw, qh, C)

    out = (gather(iy0i, ix0i) * (wy0 * wx0)[..., None]
           + gather(iy0i, ix1i) * (wy0 * wx1)[..., None]
           + gather(iy1i, ix0i) * (wy1 * wx0)[..., None]
           + gather(iy1i, ix1i) * (wy1 * wx1)[..., None])
    return out


def query_rgb(params, inp_nchw, feat_nchw, coord, cell, temperature=0.0, key=None):
    inp = jnp.transpose(inp_nchw, (0, 2, 3, 1)).astype(jnp.float32)
    feat = jnp.transpose(feat_nchw, (0, 2, 3, 1)).astype(jnp.float32)
    B, Hf, Wf, _ = feat.shape
    _, qw, qh, _ = coord.shape
    hidden = params["coef_w"].shape[-1]
    h2 = hidden // 2
    flow_layers = params["w3"].shape[-1] // 6
    Q = qw * qh
    N = B * Q

    # --- fused coef/freq 3x3 conv: single im2col matmul over 2*hidden channels
    w_cat = jnp.concatenate([params["coef_w"], params["freq_w"]], axis=-1)
    b_cat = jnp.concatenate([params["coef_b"], params["freq_b"]], axis=-1)
    cf = conv3x3_pallas(feat, w_cat, b_cat)
    coef = cf[..., :hidden].reshape(B, Hf * Wf, hidden)
    freq = cf[..., hidden:].reshape(B, Hf * Wf, hidden)

    rx = 1.0 / Hf
    ry = 1.0 / Wf
    eps = 1e-6
    coord_flat = coord.reshape(B, Q, 2).astype(jnp.float32)

    coef_a_l, coef_b_l, freq_a_l, freq_b_l, rel0_l, rel1_l = [], [], [], [], [], []
    for vx in (-1, 1):
        for vy in (-1, 1):
            shift = jnp.array([vx * rx + eps, vy * ry + eps], jnp.float32)
            c_ = jnp.clip(coord_flat + shift, -1.0 + 1e-6, 1.0 - 1e-6)
            # nearest grid_sample, align_corners=False (jnp.round: half-to-even edge case)
            iy = jnp.clip(jnp.round(((c_[..., 0] + 1.0) * Hf - 1.0) / 2.0), 0, Hf - 1).astype(jnp.int32)
            ix = jnp.clip(jnp.round(((c_[..., 1] + 1.0) * Wf - 1.0) / 2.0), 0, Wf - 1).astype(jnp.int32)
            idx = (iy * Wf + ix)[..., None]                       # (B, Q, 1)
            qy = -1.0 + (2.0 * iy.astype(jnp.float32) + 1.0) / Hf
            qx = -1.0 + (2.0 * ix.astype(jnp.float32) + 1.0) / Wf
            rel0_l.append(((coord_flat[..., 0] - qy) * Hf).reshape(N))
            rel1_l.append(((coord_flat[..., 1] - qx) * Wf).reshape(N))
            g_coef = jnp.take_along_axis(coef, idx, axis=1).reshape(N, hidden)
            g_freq = jnp.take_along_axis(freq, idx, axis=1).reshape(N, hidden)
            coef_a_l.append(g_coef[:, :h2])
            coef_b_l.append(g_coef[:, h2:])
            freq_a_l.append(g_freq[:, :h2])
            freq_b_l.append(g_freq[:, h2:])

    # corner-blocked, lane-dense (N, 4*h2) slabs
    coef_a = jnp.concatenate(coef_a_l, axis=-1)
    coef_b = jnp.concatenate(coef_b_l, axis=-1)
    freq_a = jnp.concatenate(freq_a_l, axis=-1)
    freq_b = jnp.concatenate(freq_b_l, axis=-1)

    rc0 = jnp.stack(rel0_l, axis=-1)                              # (N, 4)
    rc1 = jnp.stack(rel1_l, axis=-1)
    rc0p = rc0[:, ::-1]                                           # area swap 0<->3, 1<->2
    rc1p = rc1[:, ::-1]

    # phase(rel_cell): tiny (B,2)@(2,h2) in plain JAX, broadcast per pixel.
    rel_cell = cell.astype(jnp.float32) * jnp.array([Hf, Wf], jnp.float32)
    pvec = jnp.broadcast_to((rel_cell @ params["phase_w"])[:, None, :],
                            (B, Q, h2)).reshape(N, h2)

    base = _bilinear_border_sample(inp, coord.astype(jnp.float32)).reshape(N, 3)

    if key is None or temperature == 0.0:
        z0 = jnp.zeros((N, 3), jnp.float32)
    else:
        z0 = temperature * jax.random.normal(key, (N, 3), jnp.float32)

    # one packed per-pixel side-channel slab
    side = jnp.concatenate([rc0, rc0p, rc1, rc1p, pvec, base, z0], axis=-1)

    tile_n = 256
    N_pad = _round_up(N, tile_n)
    s_pad = _round_up(side.shape[-1], 128)
    pad_rows = N_pad - N
    side = jnp.pad(side, ((0, pad_rows), (0, s_pad - side.shape[-1])))
    coef_a = jnp.pad(coef_a, ((0, pad_rows), (0, 0)))
    coef_b = jnp.pad(coef_b, ((0, pad_rows), (0, 0)))
    freq_a = jnp.pad(freq_a, ((0, pad_rows), (0, 0)))
    freq_b = jnp.pad(freq_b, ((0, pad_rows), (0, 0)))

    # 0/1 lane-expansion matrices (corner scalar -> h2 lanes; pvec tiled 4x)
    fh = 4 * h2
    lane_corner = jnp.arange(fh) // h2
    ea = (jnp.arange(8)[:, None] == lane_corner[None, :]).astype(jnp.float32)
    eb = ((jnp.arange(8)[:, None] - 4) == lane_corner[None, :]).astype(jnp.float32)
    tm = (jnp.arange(h2)[:, None] == (jnp.arange(fh)[None, :] % h2)).astype(jnp.float32)

    # MLP weights: permute rows/cols into the kernel's lane layout, cast to bf16.
    bf16 = jnp.bfloat16
    w0r = params["w0"].reshape(4, 2, h2, hidden)
    w0a = w0r[:, 0].reshape(fh, hidden).astype(bf16)
    w0b = w0r[:, 1].reshape(fh, hidden).astype(bf16)
    w3r = params["w3"].reshape(hidden, flow_layers, 2, 3)
    w3k = jnp.concatenate([w3r[:, :, 0].reshape(hidden, 3 * flow_layers),
                           w3r[:, :, 1].reshape(hidden, 3 * flow_layers)],
                          axis=-1).astype(bf16)
    b3r = params["b3"].reshape(flow_layers, 2, 3)
    b3k = jnp.concatenate([b3r[:, 0].reshape(3 * flow_layers),
                           b3r[:, 1].reshape(3 * flow_layers)],
                          axis=-1).astype(jnp.float32)
    mlp = (w0a, w0b, params["b0"].astype(jnp.float32),
           params["w1"].astype(bf16), params["b1"].astype(jnp.float32),
           params["w2"].astype(bf16), params["b2"].astype(jnp.float32),
           w3k, b3k)

    out_pad = ensemble_flow(side, coef_a, coef_b, freq_a, freq_b, ea, eb, tm, mlp,
                            h2=h2, flow_layers=flow_layers, tile_n=tile_n)
    pred = out_pad[:N, :3].reshape(B, qw, qh, 3).transpose(0, 3, 1, 2)  # back to NCHW
    return pred


def linf_forward(params, op, inp=None, feat=None, coord=None, cell=None, gt=None,
                 temperature=0.0, key=None):
    if op == "query_rgb":
        return query_rgb(params, inp, feat, coord, cell, temperature, key)
    # TODO(synk): 'gen_feat'/'log_p'/'query_log_p' depend on external encoder/imnet specs.
    raise NotImplementedError(op)


def init_params(key, *, feat_dim, hidden_dim, flow_layers):
    ks = jax.random.split(key, 10)
    n = lambda k, s, scale: scale * jax.random.normal(k, s, jnp.float32)
    h2 = hidden_dim // 2
    return {
        "coef_w": n(ks[0], (3, 3, feat_dim, hidden_dim), 0.05),
        "coef_b": n(ks[1], (hidden_dim,), 0.05),
        "freq_w": n(ks[2], (3, 3, feat_dim, hidden_dim), 0.05),
        "freq_b": n(ks[3], (hidden_dim,), 0.05),
        "phase_w": n(ks[4], (2, h2), 0.05),
        "w0": n(ks[5], (4 * hidden_dim, hidden_dim), 0.05),
        "b0": jnp.zeros((hidden_dim,), jnp.float32),
        "w1": n(ks[6], (hidden_dim, hidden_dim), 0.05),
        "b1": jnp.zeros((hidden_dim,), jnp.float32),
        "w2": n(ks[7], (hidden_dim, hidden_dim), 0.05),
        "b2": jnp.zeros((hidden_dim,), jnp.float32),
        "w3": n(ks[8], (hidden_dim, flow_layers * 6), 0.05),
        "b3": jnp.zeros((flow_layers * 6,), jnp.float32),
    }


if __name__ == "__main__":
    key = jax.random.PRNGKey(0)
    k_param, k_inp, k_feat = jax.random.split(key, 3)

    B, feat_dim, Hf, Wf = 2, 8, 8, 8
    Hin, Win = 16, 16
    qw, qh = 8, 8
    hidden_dim, flow_layers = 32, 4

    params = init_params(k_param, feat_dim=feat_dim, hidden_dim=hidden_dim,
                         flow_layers=flow_layers)

    inp = jax.random.normal(k_inp, (B, 3, Hin, Win), jnp.float32)     # NCHW like PyTorch
    feat = jax.random.normal(k_feat, (B, feat_dim, Hf, Wf), jnp.float32)
    coord = jnp.broadcast_to(make_coord((qw, qh)), (B, qw, qh, 2))
    cell = jnp.broadcast_to(jnp.array([2.0 / qw, 2.0 / qh], jnp.float32), (B, 2))

    out = linf_forward(params, "query_rgb", inp=inp, feat=feat, coord=coord,
                       cell=cell, temperature=0.0)
    out = jax.block_until_ready(out)
    assert out.shape == (B, 3, qw, qh)
    print("KERNEL_OK")
</pallas_src>

<mosaic_0001>
module attributes {stable_mosaic.version = 11 : i64} {
  func.func @_matmul_bias_kernel(%arg0: i32, %arg1: memref<256x72xbf16, #tpu.memory_space<vmem>>, %arg2: memref<72x128xbf16, #tpu.memory_space<vmem>>, %arg3: memref<1x128xf32, #tpu.memory_space<vmem>>, %arg4: memref<256x128xf32, #tpu.memory_space<vmem>>) attributes {dimension_semantics = [#tpu.dimension_semantics<parallel>], iteration_bounds = array<i64: 1>, scalar_prefetch = 0 : i64, scratch_operands = 0 : i64, tpu.core_type = #tpu.core_type<tc>, window_params = [{transform_indices = @transform_0, window_bounds = array<i64: 256, 72>}, {pipeline_mode = #tpu.pipeline_mode<synchronous>, transform_indices = @transform_1, window_bounds = array<i64: 72, 128>}, {pipeline_mode = #tpu.pipeline_mode<synchronous>, transform_indices = @transform_2, window_bounds = array<i64: 1, 128>}, {transform_indices = @transform_3, window_bounds = array<i64: 256, 128>}]} {
    %c0 = arith.constant 0 : index
    %c0_0 = arith.constant 0 : index
    %0 = vector.load %arg1[%c0, %c0_0] : memref<256x72xbf16, #tpu.memory_space<vmem>>, vector<256x72xbf16>
    %c0_1 = arith.constant 0 : index
    %c0_2 = arith.constant 0 : index
    %1 = vector.load %arg2[%c0_1, %c0_2] : memref<72x128xbf16, #tpu.memory_space<vmem>>, vector<72x128xbf16>
    %cst = arith.constant dense<0.000000e+00> : vector<256x128xf32>
    %2 = tpu.matmul %0, %1, %cst {dimension_numbers = #tpu.dot_dimension_numbers<[1], [0], [0], [1], [0, 0, 1, 1], [], []>} : vector<256x72xbf16>, vector<72x128xbf16>, vector<256x128xf32> -> vector<256x128xf32>
    %c0_3 = arith.constant 0 : index
    %c0_4 = arith.constant 0 : index
    %3 = vector.load %arg3[%c0_3, %c0_4] : memref<1x128xf32, #tpu.memory_space<vmem>>, vector<1x128xf32>
    %4 = vector.broadcast %3 : vector<1x128xf32> to vector<256x128xf32>
    %5 = arith.addf %2, %4 : vector<256x128xf32>
    %c0_5 = arith.constant 0 : index
    %c0_6 = arith.constant 0 : index
    %6 = vector.load %arg4[%c0_5, %c0_6] : memref<256x128xf32, #tpu.memory_space<vmem>>, vector<256x128xf32>
    tpu.vector_store %arg4[%c0_5, %c0_6], %5 {strides = array<i32>} : memref<256x128xf32, #tpu.memory_space<vmem>>, vector<256x128xf32>,
    return
  }
  func.func @transform_0(%arg0: i32) -> (i32, i32) {
    %c0_i32 = arith.constant 0 : i32
    %c0_i32_0 = arith.constant 0 : i32
    return %arg0, %c0_i32 : i32, i32
  }
  func.func @transform_1(%arg0: i32) -> (i32, i32) {
    %c0_i32 = arith.constant 0 : i32
    %c0_i32_0 = arith.constant 0 : i32
    %c0_i32_1 = arith.constant 0 : i32
    return %c0_i32, %c0_i32_0 : i32, i32
  }
  func.func @transform_2(%arg0: i32) -> (i32, i32) {
    %c0_i32 = arith.constant 0 : i32
    %c0_i32_0 = arith.constant 0 : i32
    %c0_i32_1 = arith.constant 0 : i32
    return %c0_i32, %c0_i32_0 : i32, i32
  }
  func.func @transform_3(%arg0: i32) -> (i32, i32) {
    %c0_i32 = arith.constant 0 : i32
    %c0_i32_0 = arith.constant 0 : i32
    return %arg0, %c0_i32 : i32, i32
  }
}

</mosaic_0001>

<bundles_post_ra>
// kernel: tpu_custom_call.1
= control target key start
LH: loop header
LB: loop body
LE: loop exit
PB: predicated region body
PF: predicated region fallthrough
CT: control target
= control target key end

     0   :  { %vm171_vm0 = vcmask 588800   ;;  %vm220_vm1 = vcmask 1043456   ;;  %s745_s0 = inlined_call_operand.vmem [shape: bf16[256,72], index: 0, kind: input, shape index: {}]   ;;  %s746_s1 = inlined_call_operand.vmem [shape: bf16[72,128], index: 1, kind: input, shape index: {}]   ;;  %s747_s2 = inlined_call_operand.vmem [shape: f32[1,128], index: 2, kind: input, shape index: {}]   ;;  %s748_s3 = inlined_call_operand.hbm [shape: f32[256,128], index: 3, kind: output, shape index: {}]  }
   0x1   :  { %v549_v0 = vld [vmem:[%s746_s1] sm:$0xff]   ;;  %v550_v1 = vld [vmem:[%s746_s1 + $0x8] sm:$0xff]   ;;  %v551_v2 = vld [vmem:[%s746_s1 + $0x10] sm:$0xff]  }
   0x2   :  { %492 = vmatprep.subr.bf16.mxu0 %v549_v0  ;;  %534 = vmatprep.subr.bf16.mxu1 %v549_v0  ;;  %v554_v3 = vld [vmem:[%s745_s0] sm:$0xff]   ;;  %v552_v5 = vld [vmem:[%s746_s1 + $0x18] sm:$0xff]   ;;  %v556_v8 = vld [vmem:[%s745_s0 + $0x8] sm:$0xff]  }
   0x3   :  { %493 = vmatpush3.bf16.msra.mxu0 %v549_v0  ;;  %539 = vmatpush3.bf16.msra.mxu1 %v549_v0  ;;  %v555_v4 = vld [vmem:[%s745_s0 + $0x40] sm:$0xff]   ;;  %v557_v9 = vld [vmem:[%s745_s0 + $0x48] sm:$0xff]   ;;  %v558_v10 = vld [vmem:[%s745_s0 + $0x10] sm:$0xff]  }
   0x4   :  { %494 = vmatprep.subr.bf16.mxu0 %v550_v1  ;;  %535 = vmatprep.subr.bf16.mxu1 %v550_v1  ;;  %v553_v6 = vld [vmem:[%s746_s1 + $0x20] ss:$0 sps:$4 sm:$0xff]   ;;  %v559_v11 = vld [vmem:[%s745_s0 + $0x50] sm:$0xff]  }
   0x5   :  { %502 = vmatprep.mubr.msk.bf16.mxu0 %vm171_vm0, %v554_v3  ;;  %518 = vmatprep.mubr.msk.bf16.mxu1 %vm171_vm0, %v555_v4  ;;  %v222_v7 = vsel %vm220_vm1, %v553_v6, 0 }
   0x7   :  { %495 = vmatpush3.bf16.msra.mxu0 %v550_v1  ;;  %540 = vmatpush3.bf16.msra.mxu1 %v550_v1 }
   0x8   :  { %496 = vmatprep.subr.bf16.mxu0 %v551_v2  ;;  %536 = vmatprep.subr.bf16.mxu1 %v551_v2 }
   0xb   :  { %497 = vmatpush3.bf16.msra.mxu0 %v551_v2  ;;  %541 = vmatpush3.bf16.msra.mxu1 %v551_v2 }
   0xc   :  { %498 = vmatprep.subr.bf16.mxu0 %v552_v5  ;;  %537 = vmatprep.subr.bf16.mxu1 %v552_v5 }
   0xf   :  { %499 = vmatpush3.bf16.msra.mxu0 %v552_v5  ;;  %542 = vmatpush3.bf16.msra.mxu1 %v552_v5 }
  0x10   :  { %544 = vmatprep.subr.msk.bf16.mxu0 %vm220_vm1, %v553_v6  ;;  %545 = vmatprep.subr.msk.bf16.mxu1 %vm220_vm1, %v553_v6 }
  0x13   :  { %501 = vmatpush3.bf16.msra.mxu0 %v222_v7  ;;  %543 = vmatpush3.bf16.msra.mxu1 %v222_v7 }
  0x14   :  { %8 = vsyncpa [#allocation3], 0  ;;  %v560_v12 = vld [vmem:[%s745_s0 + $0x18] sm:$0xff]   ;;  %v562_v14 = vld [vmem:[%s745_s0 + $0x20] sm:$0xff]  }
  0x15   :  { %v561_v13 = vld [vmem:[%s745_s0 + $0x58] sm:$0xff]   ;;  %v563_v15 = vld [vmem:[%s745_s0 + $0x60] sm:$0xff]   ;;  %v564_v16 = vld [vmem:[%s745_s0 + $0x28] sm:$0xff]  }
  0x16   :  { %503 = vmatmul.mubr.msk.bf16.vlgmr.msra.gmra.mrb[0].mxu0 %vm171_vm0, %v556_v8  ;;  %519 = vmatmul.mubr.msk.bf16.vlgmr.msra.gmra.mrb[0].mxu1 %vm171_vm0, %v557_v9  ;;  %v565_v17 = vld [vmem:[%s745_s0 + $0x68] sm:$0xff]   ;;  %v566_v18 = vld [vmem:[%s745_s0 + $0x30] sm:$0xff]   ;;  %v568_v20 = vld [vmem:[%s745_s0 + $0x38] sm:$0xff]  }
  0x17   :  { %506 = vmatprep.mubr.msk.bf16.mxu0 %vm171_vm0, %v558_v10  ;;  %522 = vmatprep.mubr.msk.bf16.mxu1 %vm171_vm0, %v559_v11  ;;  %v567_v19 = vld [vmem:[%s745_s0 + $0x70] sm:$0xff]   ;;  %v569_v21 = vld [vmem:[%s745_s0 + $0x78] sm:$0xff]   ;;  %v699_v22 = vld [vmem:[%s747_s2] ss:$0 sm:$0xff]  ;;  %s594_s0 = smov [#allocation2]  }
  0x18   :  { %s422_s2 = sshll.u32 %s594_s0, 4  ;;  %s423_s2 = int_to_ptr.vmem [resolvable:$true] %s422_s2 }
  0x19   :  { %s570_s28 = scalar_lea.vmem %s423_s2, 4096  ;;  %p575_p1 = scmp.lt.s32.totalorder %s423_s2, %s423_s2 }
  0x1a   :  { %p571_p0 = scmp.ne.s32.totalorder %s423_s2, %s570_s28  ;;  %p576_p2 = scmp.lt.s32.totalorder %s570_s28, %s570_s28 }
  0x1c   :  { %p577_p3 = por %p576_p2, %p575_p1 }
  0x1e   :  { %507 = vmatmul.mubr.msk.bf16.gmra.mrb[4].mxu0 %vm171_vm0, %v560_v12  ;;  %523 = vmatmul.mubr.msk.bf16.gmra.mrb[4].mxu1 %vm171_vm0, %v561_v13  ;;  %p578_p4 = pnand %p577_p3, %p571_p0 }
  0x1f   :  { %510 = vmatprep.mubr.msk.bf16.mxu0 %vm171_vm0, %v562_v14  ;;  %526 = vmatprep.mubr.msk.bf16.mxu1 %vm171_vm0, %v563_v15 }
  0x26   :  { %511 = vmatmul.mubr.msk.bf16.gmra.mrb[8].mxu0 %vm171_vm0, %v564_v16  ;;  %527 = vmatmul.mubr.msk.bf16.gmra.mrb[8].mxu1 %vm171_vm0, %v565_v17 }
  0x27   :  { %514 = vmatprep.mubr.msk.bf16.mxu0 %vm171_vm0, %v566_v18  ;;  %530 = vmatprep.mubr.msk.bf16.mxu1 %vm171_vm0, %v567_v19 }
  0x2e   :  { %515 = vmatmul.mubr.msk.bf16.gmra.mrb[12].mxu0 %vm171_vm0, %v568_v20  ;;  %531 = vmatmul.mubr.msk.bf16.gmra.mrb[12].mxu1 %vm171_vm0, %v569_v21 }
  0xe9   :  { %v504_v23 = vpop.f32.mrb[0].mxu0  ;;  %v520_v24 = vpop.f32.mrb[0].mxu1 }
  0xea   :  { %v267_v25 = vadd.f32 %v504_v23, %v699_v22  ;;  %v331_v26 = vadd.f32 %v520_v24, %v699_v22  ;;  %v258_v27 = vpop.f32.mrb[1].mxu0  ;;  %v322_v28 = vpop.f32.mrb[1].mxu1 }
  0xeb   :  { %v259_v29 = vadd.f32 %v699_v22, %v258_v27  ;;  %v323_v30 = vadd.f32 %v699_v22, %v322_v28  ;;  %v505_v31 = vpop.f32.mrb[2].mxu0  ;;  %v521_v32 = vpop.f32.mrb[2].mxu1 }
  0xec   :  { %387 = vst [vmem:[#allocation2 + $0x10] sm:$0xff] %v267_v25  ;;  %403 = vst [vmem:[#allocation2 + $0x90] sm:$0xff] %v331_v26  ;;  %v270_v33 = vadd.f32 %v505_v31, %v699_v22  ;;  %v334_v34 = vadd.f32 %v521_v32, %v699_v22  ;;  %v261_v35 = vpop.f32.mrb[3].mxu0  ;;  %v325_v36 = vpop.f32.mrb[3].mxu1 }
  0xed   :  { %385 = vst [vmem:[#allocation2] sm:$0xff] %v259_v29  ;;  %401 = vst [vmem:[#allocation2 + $0x80] sm:$0xff] %v323_v30  ;;  %v262_v37 = vadd.f32 %v699_v22, %v261_v35  ;;  %v326_v38 = vadd.f32 %v699_v22, %v325_v36 }
  0xee   :  { %388 = vst [vmem:[#allocation2 + $0x18] sm:$0xff] %v270_v33  ;;  %404 = vst [vmem:[#allocation2 + $0x98] sm:$0xff] %v334_v34 }
  0xef   :  { %386 = vst [vmem:[#allocation2 + $0x8] sm:$0xff] %v262_v37  ;;  %402 = vst [vmem:[#allocation2 + $0x88] sm:$0xff] %v326_v38 }
  0xf1   :  { %v508_v39 = vpop.f32.mrb[4].mxu0  ;;  %v524_v40 = vpop.f32.mrb[4].mxu1 }
  0xf2   :  { %v283_v41 = vadd.f32 %v508_v39, %v699_v22  ;;  %v347_v42 = vadd.f32 %v524_v40, %v699_v22  ;;  %v274_v43 = vpop.f32.mrb[5].mxu0  ;;  %v338_v44 = vpop.f32.mrb[5].mxu1 }
  0xf3   :  { %v275_v45 = vadd.f32 %v699_v22, %v274_v43  ;;  %v339_v46 = vadd.f32 %v699_v22, %v338_v44  ;;  %v509_v47 = vpop.f32.mrb[6].mxu0  ;;  %v525_v48 = vpop.f32.mrb[6].mxu1 }
  0xf4   :  { %391 = vst [vmem:[#allocation2 + $0x30] sm:$0xff] %v283_v41  ;;  %407 = vst [vmem:[#allocation2 + $0xb0] sm:$0xff] %v347_v42  ;;  %v286_v49 = vadd.f32 %v509_v47, %v699_v22  ;;  %v350_v50 = vadd.f32 %v525_v48, %v699_v22  ;;  %v277_v51 = vpop.f32.mrb[7].mxu0  ;;  %v341_v52 = vpop.f32.mrb[7].mxu1 }
  0xf5   :  { %389 = vst [vmem:[#allocation2 + $0x20] sm:$0xff] %v275_v45  ;;  %405 = vst [vmem:[#allocation2 + $0xa0] sm:$0xff] %v339_v46  ;;  %v278_v53 = vadd.f32 %v699_v22, %v277_v51  ;;  %v342_v54 = vadd.f32 %v699_v22, %v341_v52 }
  0xf6   :  { %392 = vst [vmem:[#allocation2 + $0x38] sm:$0xff] %v286_v49  ;;  %408 = vst [vmem:[#allocation2 + $0xb8] sm:$0xff] %v350_v50 }
  0xf7   :  { %390 = vst [vmem:[#allocation2 + $0x28] sm:$0xff] %v278_v53  ;;  %406 = vst [vmem:[#allocation2 + $0xa8] sm:$0xff] %v342_v54 }
  0xf9   :  { %v512_v55 = vpop.f32.mrb[8].mxu0  ;;  %v528_v56 = vpop.f32.mrb[8].mxu1 }
  0xfa   :  { %v299_v57 = vadd.f32 %v512_v55, %v699_v22  ;;  %v363_v58 = vadd.f32 %v528_v56, %v699_v22  ;;  %v290_v59 = vpop.f32.mrb[9].mxu0  ;;  %v354_v60 = vpop.f32.mrb[9].mxu1 }
  0xfb   :  { %v291_v61 = vadd.f32 %v699_v22, %v290_v59  ;;  %v355_v62 = vadd.f32 %v699_v22, %v354_v60  ;;  %v513_v63 = vpop.f32.mrb[10].mxu0  ;;  %v529_v0 = vpop.f32.mrb[10].mxu1 }
  0xfc   :  { %395 = vst [vmem:[#allocation2 + $0x50] sm:$0xff] %v299_v57  ;;  %411 = vst [vmem:[#allocation2 + $0xd0] sm:$0xff] %v363_v58  ;;  %v302_v1 = vadd.f32 %v513_v63, %v699_v22  ;;  %v366_v2 = vadd.f32 %v529_v0, %v699_v22  ;;  %v293_v3 = vpop.f32.mrb[11].mxu0  ;;  %v357_v4 = vpop.f32.mrb[11].mxu1 }
  0xfd   :  { %393 = vst [vmem:[#allocation2 + $0x40] sm:$0xff] %v291_v61  ;;  %409 = vst [vmem:[#allocation2 + $0xc0] sm:$0xff] %v355_v62  ;;  %v294_v5 = vadd.f32 %v699_v22, %v293_v3  ;;  %v358_v6 = vadd.f32 %v699_v22, %v357_v4 }
  0xfe   :  { %396 = vst [vmem:[#allocation2 + $0x58] sm:$0xff] %v302_v1  ;;  %412 = vst [vmem:[#allocation2 + $0xd8] sm:$0xff] %v366_v2 }
  0xff   :  { %394 = vst [vmem:[#allocation2 + $0x48] sm:$0xff] %v294_v5  ;;  %410 = vst [vmem:[#allocation2 + $0xc8] sm:$0xff] %v358_v6 }
 0x101   :  { %v516_v7 = vpop.f32.mrb[12].mxu0  ;;  %v532_v8 = vpop.f32.mrb[12].mxu1 }
 0x102   :  { %v315_v9 = vadd.f32 %v516_v7, %v699_v22  ;;  %v379_v10 = vadd.f32 %v532_v8, %v699_v22  ;;  %v306_v11 = vpop.f32.mrb[13].mxu0  ;;  %v370_v12 = vpop.f32.mrb[13].mxu1 }
 0x103   :  { %v307_v13 = vadd.f32 %v699_v22, %v306_v11  ;;  %v371_v14 = vadd.f32 %v699_v22, %v370_v12  ;;  %v517_v15 = vpop.f32.mrb[14].mxu0  ;;  %v533_v16 = vpop.f32.mrb[14].mxu1 }
 0x104   :  { %399 = vst [vmem:[#allocation2 + $0x70] sm:$0xff] %v315_v9  ;;  %415 = vst [vmem:[#allocation2 + $0xf0] sm:$0xff] %v379_v10  ;;  %v318_v17 = vadd.f32 %v517_v15, %v699_v22  ;;  %v382_v18 = vadd.f32 %v533_v16, %v699_v22  ;;  %v309_v19 = vpop.f32.mrb[15].mxu0  ;;  %v373_v20 = vpop.f32.mrb[15].mxu1 }
 0x105   :  { %397 = vst [vmem:[#allocation2 + $0x60] sm:$0xff] %v307_v13  ;;  %413 = vst [vmem:[#allocation2 + $0xe0] sm:$0xff] %v371_v14  ;;  %v310_v21 = vadd.f32 %v699_v22, %v309_v19  ;;  %v374_v23 = vadd.f32 %v699_v22, %v373_v20 }
 0x106   :  { %400 = vst [vmem:[#allocation2 + $0x78] sm:$0xff] %v318_v17  ;;  %416 = vst [vmem:[#allocation2 + $0xf8] sm:$0xff] %v382_v18 }
 0x107   :  { %398 = vst [vmem:[#allocation2 + $0x68] sm:$0xff] %v310_v21  ;;  %414 = vst [vmem:[#allocation2 + $0xe8] sm:$0xff] %v374_v23 }
 0x108   :  { %581 = shalt.err (!%p578_p4)
}
 0x109   :  { %s582_s4 = scalar_lea.hbm %s748_s3, 4096 }
 0x10a   :  { %p583_p5 = scmp.ne.s32.totalorder %s748_s3, %s582_s4  ;;  %p586_p6 = scmp.lt.u32.totalorder %s582_s4, %s748_s3 }
 0x10c   :  { %p588_p7 = pnand %p586_p6, %p583_p5 }
 0x10e   :  { %591 = shalt.err (!%p588_p7)
}
 0x10f   :  { %s595_s8 = smov 128   ;;  %s596_s9 = smov 8  }
 0x110   :  { %428 = dma.vmem_to_hbm [thread:$0]  %s423_s2, 4096, %s748_s3, [#allocation3], %s595_s8, %s595_s8, %s596_s9  }
 0x111   :  { %592 = dma.done.wait [#allocation3], 4096  }
 0x112   :  { %593 = vsyncadd [#allocation3], 4294963200 }
 0x113   :  { %432 = vsyncpa [#allocation3], 1 }

</bundles_post_ra>
